<compile_context>
chip_gen: v7x
topology: tpu7x:2x2x1
jax: 0.10.0
libtpu: 0.0.40
codegen_flags: <defaults>
</compile_context>

<pallas_src>
import jax
import jax.numpy as jnp
from jax.experimental import pallas as pl
from jax.experimental.pallas import tpu as pltpu


def _round_up(n: int, m: int) -> int:
    return ((n + m - 1) // m) * m


# ----------------------------------------------------------------------------
# Kernel 1: fused affine + tanh    y = tanh(x @ W + b)       (MXU + EUP)
# (also serves the folded normalize -> linear -> tanh chain)
# ----------------------------------------------------------------------------
def _affine_tanh_kernel(x_ref, w_ref, b_ref, o_ref):
    z = jnp.dot(x_ref[...], w_ref[...], preferred_element_type=jnp.float32)
    z = z + b_ref[...]                     # (1, Hp) broadcasts over batch rows
    o_ref[...] = jnp.tanh(z).astype(o_ref.dtype)


def affine_tanh_pallas(x, w_p, b_p, out_dim, *, block_m=128):
    """tanh(x @ w + b) with pre-padded (lane-dense) weights/bias.

    w_p : (F, Hp)  with Hp a multiple of 128
    b_p : (1, Hp)
    Returns (B, out_dim).
    """
    B, F = x.shape
    Hp = w_p.shape[1]

    Bp = _round_up(max(B, 8), 8)           # at least one full sublane group
    if Bp > block_m:
        Bp = _round_up(Bp, block_m)
        bm = block_m
    else:
        bm = Bp

    x_p = x if Bp == B else jnp.pad(x, ((0, Bp - B), (0, 0)))

    out = pl.pallas_call(
        _affine_tanh_kernel,
        out_shape=jax.ShapeDtypeStruct((Bp, Hp), x.dtype),
        grid=(Bp // bm,),
        in_specs=[
            pl.BlockSpec((bm, F), lambda i: (i, 0)),
            pl.BlockSpec((F, Hp), lambda i: (0, 0)),   # resident across grid steps
            pl.BlockSpec((1, Hp), lambda i: (0, 0)),
        ],
        out_specs=pl.BlockSpec((bm, Hp), lambda i: (i, 0)),
        compiler_params=pltpu.CompilerParams(
            dimension_semantics=("parallel",),   # batch tiles shard across v7x TCs
        ),
    )(x_p, w_p, b_p)
    return out[:B, :out_dim]


# ----------------------------------------------------------------------------
# Kernel 2: elementwise observation normalization  y = (x - loc) * inv_scale
# (only used when an ObsNormTransform is NOT folded into a following linear)
# ----------------------------------------------------------------------------
def _obs_norm_kernel(x_ref, loc_ref, inv_ref, o_ref):
    o_ref[...] = ((x_ref[...] - loc_ref[...]) * inv_ref[...]).astype(o_ref.dtype)


def obs_norm_pallas(x, loc_p, inv_p, out_dim, *, block_m=256):
    """(x - loc) * inv_scale with pre-padded (lane-dense) loc / 1/scale."""
    B, F = x.shape
    Fp = loc_p.shape[1]

    Bp = _round_up(max(B, 8), 8)
    if Bp > block_m:
        Bp = _round_up(Bp, block_m)
        bm = block_m
    else:
        bm = Bp

    x_p = x
    if Bp != B or Fp != F:
        x_p = jnp.pad(x, ((0, Bp - B), (0, Fp - F)))

    out = pl.pallas_call(
        _obs_norm_kernel,
        out_shape=jax.ShapeDtypeStruct((Bp, Fp), x.dtype),
        grid=(Bp // bm,),
        in_specs=[
            pl.BlockSpec((bm, Fp), lambda i: (i, 0)),
            pl.BlockSpec((1, Fp), lambda i: (0, 0)),
            pl.BlockSpec((1, Fp), lambda i: (0, 0)),
        ],
        out_specs=pl.BlockSpec((bm, Fp), lambda i: (i, 0)),
        compiler_params=pltpu.CompilerParams(
            dimension_semantics=("parallel",),
        ),
    )(x_p, loc_p, inv_p)
    return out[:B, :out_dim]


# ----------------------------------------------------------------------------
# Transforms (dict -> dict), Pallas-backed.  Parameters are padded ONCE here.
# ----------------------------------------------------------------------------
class ObsNormTransform:
    def __init__(self, loc, scale):
        self.loc = loc        # (1, F) raw (used by Compose's fusion pass)
        self.scale = scale    # (1, F)
        F = loc.shape[1]
        Fp = _round_up(F, 128)
        inv = 1.0 / scale                                  # exact, trace-time
        # padded lanes: loc=0, inv=0 -> padded output lanes are 0 (sliced off)
        self._loc_p = loc if Fp == F else jnp.pad(loc, ((0, 0), (0, Fp - F)))
        self._inv_p = inv if Fp == F else jnp.pad(inv, ((0, 0), (0, Fp - F)))
        self._F = F

    def __call__(self, td: dict) -> dict:
        out = dict(td)
        out["observation"] = obs_norm_pallas(
            td["observation"], self._loc_p, self._inv_p, self._F)
        return out


class LinearTanhTransform:
    def __init__(self, w, b):
        self.w = w            # (F, H) raw
        self.b = b            # (1, H)
        F, H = w.shape
        Hp = _round_up(H, 128)
        self._w_p = w if Hp == H else jnp.pad(w, ((0, 0), (0, Hp - H)))
        self._b_p = b if Hp == H else jnp.pad(b, ((0, 0), (0, Hp - H)))
        self._H = H

    def __call__(self, td: dict) -> dict:
        out = dict(td)
        out["observation"] = affine_tanh_pallas(
            td["observation"], self._w_p, self._b_p, self._H)
        return out


def _fold_norm_into_linear(loc, scale, w, b):
    """(x-loc)/scale @ W + b  ==  x @ W' + b'  with  W' = W/scale^T,
    b' = b - (loc/scale) @ W."""
    inv = 1.0 / scale                       # (1, F), exact f32 at trace time
    w_f = w * inv.T                         # scale row k of W by 1/scale[k]
    b_f = b - (loc * inv) @ w               # (1, H)
    return w_f, b_f


# ----------------------------------------------------------------------------
# _Compose: same forward semantics as the PyTorch module (sequential apply),
# with a construction-time fusion pass that folds ObsNorm -> LinearTanh pairs
# into a single fused Pallas kernel.
# ----------------------------------------------------------------------------
class Compose:
    def __init__(self, *transforms):
        self._transforms = self._fuse(list(transforms))

    @staticmethod
    def _fuse(transforms):
        fused, i = [], 0
        while i < len(transforms):
            t = transforms[i]
            if (isinstance(t, ObsNormTransform)
                    and i + 1 < len(transforms)
                    and isinstance(transforms[i + 1], LinearTanhTransform)):
                nxt = transforms[i + 1]
                w_f, b_f = _fold_norm_into_linear(t.loc, t.scale, nxt.w, nxt.b)
                fused.append(LinearTanhTransform(w_f, b_f))   # one pallas_call
                i += 2
            else:
                fused.append(t)
                i += 1
        return fused

    def __call__(self, td: dict) -> dict:
        for transform in self._transforms:
            td = transform(td)
        return td


if __name__ == "__main__":
    B, F, H = 4, 16, 32   # batch, observation dim, hidden dim

    key = jax.random.PRNGKey(0)
    k_obs, k_act = jax.random.split(key)

    # example tensordict
    td = {
        "observation": jax.random.normal(k_obs, (B, F), dtype=jnp.float32),
        "action": jax.random.normal(k_act, (B, 8), dtype=jnp.float32),
    }

    # deterministic parameter init (synthetic, no checkpoint)
    loc = jnp.linspace(-0.5, 0.5, F, dtype=jnp.float32).reshape(1, F)
    scale = jnp.linspace(0.5, 1.5, F, dtype=jnp.float32).reshape(1, F)
    w = (jnp.arange(F * H, dtype=jnp.float32).reshape(F, H) % 7 - 3.0) * 0.05
    b = jnp.linspace(-0.1, 0.1, H, dtype=jnp.float32).reshape(1, H)

    # Full compose: norm -> linear+tanh  (fused into one kernel at construction)
    compose = Compose(ObsNormTransform(loc, scale), LinearTanhTransform(w, b))
    out_td = compose(td)
    jax.block_until_ready(out_td["observation"])
    jax.block_until_ready(out_td["action"])

    # reference check in plain JAX (slightly looser rtol: weights were re-associated)
    ref = jnp.tanh(((td["observation"] - loc) / scale) @ w + b)
    assert out_td["observation"].shape == (B, H)
    assert jnp.allclose(out_td["observation"], ref, atol=1e-4, rtol=1e-4)
    assert jnp.array_equal(out_td["action"], td["action"])  # pass-through key

    # Also exercise the standalone (unfused) normalization kernel path.
    norm_td = Compose(ObsNormTransform(loc, scale))(td)
    jax.block_until_ready(norm_td["observation"])
    ref_norm = (td["observation"] - loc) / scale
    assert norm_td["observation"].shape == (B, F)
    assert jnp.allclose(norm_td["observation"], ref_norm, atol=1e-5, rtol=1e-5)

    print("KERNEL_OK")
</pallas_src>

<mosaic_0001>
module attributes {stable_mosaic.version = 11 : i64} {
  func.func @_affine_tanh_kernel(%arg0: i32, %arg1: memref<8x16xf32, #tpu.memory_space<vmem>>, %arg2: memref<16x128xf32, #tpu.memory_space<vmem>>, %arg3: memref<1x128xf32, #tpu.memory_space<vmem>>, %arg4: memref<8x128xf32, #tpu.memory_space<vmem>>) attributes {dimension_semantics = [#tpu.dimension_semantics<parallel>], iteration_bounds = array<i64: 1>, scalar_prefetch = 0 : i64, scratch_operands = 0 : i64, tpu.core_type = #tpu.core_type<tc>, window_params = [{transform_indices = @transform_0, window_bounds = array<i64: 8, 16>}, {pipeline_mode = #tpu.pipeline_mode<synchronous>, transform_indices = @transform_1, window_bounds = array<i64: 16, 128>}, {pipeline_mode = #tpu.pipeline_mode<synchronous>, transform_indices = @transform_2, window_bounds = array<i64: 1, 128>}, {transform_indices = @transform_3, window_bounds = array<i64: 8, 128>}]} {
    %c0 = arith.constant 0 : index
    %c0_0 = arith.constant 0 : index
    %0 = vector.load %arg1[%c0, %c0_0] : memref<8x16xf32, #tpu.memory_space<vmem>>, vector<8x16xf32>
    %c0_1 = arith.constant 0 : index
    %c0_2 = arith.constant 0 : index
    %1 = vector.load %arg2[%c0_1, %c0_2] : memref<16x128xf32, #tpu.memory_space<vmem>>, vector<16x128xf32>
    %cst = arith.constant dense<0.000000e+00> : vector<8x128xf32>
    %2 = tpu.matmul %0, %1, %cst {dimension_numbers = #tpu.dot_dimension_numbers<[1], [0], [0], [1], [0, 0, 1, 1], [], []>} : vector<8x16xf32>, vector<16x128xf32>, vector<8x128xf32> -> vector<8x128xf32>
    %c0_3 = arith.constant 0 : index
    %c0_4 = arith.constant 0 : index
    %3 = vector.load %arg3[%c0_3, %c0_4] : memref<1x128xf32, #tpu.memory_space<vmem>>, vector<1x128xf32>
    %4 = vector.broadcast %3 : vector<1x128xf32> to vector<8x128xf32>
    %5 = arith.addf %2, %4 : vector<8x128xf32>
    %6 = math.tanh %5 : vector<8x128xf32>
    %c0_5 = arith.constant 0 : index
    %c0_6 = arith.constant 0 : index
    %7 = vector.load %arg4[%c0_5, %c0_6] : memref<8x128xf32, #tpu.memory_space<vmem>>, vector<8x128xf32>
    tpu.vector_store %arg4[%c0_5, %c0_6], %6 {strides = array<i32>} : memref<8x128xf32, #tpu.memory_space<vmem>>, vector<8x128xf32>,
    return
  }
  func.func @transform_0(%arg0: i32) -> (i32, i32) {
    %c0_i32 = arith.constant 0 : i32
    %c0_i32_0 = arith.constant 0 : i32
    return %arg0, %c0_i32 : i32, i32
  }
  func.func @transform_1(%arg0: i32) -> (i32, i32) {
    %c0_i32 = arith.constant 0 : i32
    %c0_i32_0 = arith.constant 0 : i32
    %c0_i32_1 = arith.constant 0 : i32
    return %c0_i32, %c0_i32_0 : i32, i32
  }
  func.func @transform_2(%arg0: i32) -> (i32, i32) {
    %c0_i32 = arith.constant 0 : i32
    %c0_i32_0 = arith.constant 0 : i32
    %c0_i32_1 = arith.constant 0 : i32
    return %c0_i32, %c0_i32_0 : i32, i32
  }
  func.func @transform_3(%arg0: i32) -> (i32, i32) {
    %c0_i32 = arith.constant 0 : i32
    %c0_i32_0 = arith.constant 0 : i32
    return %arg0, %c0_i32 : i32, i32
  }
}

</mosaic_0001>

<bundles_post_ra>
// kernel: tpu_custom_call.1
= control target key start
LH: loop header
LB: loop body
LE: loop exit
PB: predicated region body
PF: predicated region fallthrough
CT: control target
= control target key end

     0   :  { %8 = vsyncpa [#allocation3], 0  ;;  %s314_s0 = inlined_call_operand.hbm [shape: f32[8,16], index: 0, kind: input, shape index: {}]   ;;  %s315_s1 = inlined_call_operand.hbm [shape: f32[16,128], index: 1, kind: input, shape index: {}]   ;;  %s316_s2 = inlined_call_operand.vmem [shape: f32[1,128], index: 2, kind: input, shape index: {}]   ;;  %s317_s3 = inlined_call_operand.hbm [shape: f32[8,128], index: 3, kind: output, shape index: {}]  }
   0x1   :  { %9 = vsyncpa [#allocation6], 0 }
   0x2   :  { %10 = vsyncpa [#allocation4], 0  ;;  %s240_s12 = smov [#allocation2]   ;;  %s241_s14 = smov [#allocation5]  }
   0x3   :  { %s17_s13 = sshll.u32 %s240_s12, 4  ;;  %s26_s15 = sshll.u32 %s241_s14, 4  ;;  %s18_s13 = int_to_ptr.vmem [resolvable:$true] %s17_s13  ;;  %s268_s15 = int_to_ptr.vmem [resolvable:$true] %s26_s15 }
   0x4   :  { %s168_s18 = scalar_lea.hbm %s314_s0, 128 }
   0x5   :  { %p169_p0 = scmp.ne.s32.totalorder %s314_s0, %s168_s18  ;;  %p172_p1 = scmp.lt.u32.totalorder %s168_s18, %s314_s0 }
   0x7   :  { %p174_p2 = pnand %p172_p1, %p169_p0 }
   0x9   :  { %177 = shalt.err (!%p174_p2)
}
   0xa   :  { %s178_s23 = scalar_lea.vmem %s18_s13, 128  ;;  %p183_p4 = scmp.lt.s32.totalorder %s18_s13, %s18_s13 }
   0xb   :  { %p179_p3 = scmp.ne.s32.totalorder %s18_s13, %s178_s23  ;;  %p184_p5 = scmp.lt.s32.totalorder %s178_s23, %s178_s23 }
   0xd   :  { %p185_p6 = por %p184_p5, %p183_p4 }
   0xf   :  { %p186_p7 = pnand %p185_p6, %p179_p3 }
  0x11   :  { %189 = shalt.err (!%p186_p7)
}
  0x12   :  { %20 = dma.hbm_to_vmem [thread:$0]  %s314_s0, 128, %s18_s13, [#allocation3]  }
  0x13   :  { %s190_s28 = scalar_lea.hbm %s315_s1, 256 }
  0x14   :  { %p191_p8 = scmp.ne.s32.totalorder %s315_s1, %s190_s28  ;;  %p194_p9 = scmp.lt.u32.totalorder %s190_s28, %s315_s1 }
  0x16   :  { %p196_p10 = pnand %p194_p9, %p191_p8 }
  0x18   :  { %199 = shalt.err (!%p196_p10)
}
  0x19   :  { %s200_s6 = scalar_lea.vmem %s268_s15, 256  ;;  %p205_p12 = scmp.lt.s32.totalorder %s268_s15, %s268_s15 }
  0x1a   :  { %p201_p11 = scmp.ne.s32.totalorder %s268_s15, %s200_s6  ;;  %p206_p13 = scmp.lt.s32.totalorder %s200_s6, %s200_s6 }
  0x1c   :  { %p207_p0 = por %p206_p13, %p205_p12 }
  0x1e   :  { %p208_p1 = pnand %p207_p0, %p201_p11 }
  0x20   :  { %211 = shalt.err (!%p208_p1)
}
  0x21   :  { %s242_s0 = smov 128   ;;  %s243_s7 = smov 8  }
  0x22   :  { %32 = dma.hbm_to_vmem [thread:$0]  %s315_s1, 256, %s268_s15, [#allocation6], %s242_s0, %s242_s0, %s243_s7  }
  0x23   :  { %234 = dma.done.wait [#allocation3], 128  }
  0x24   :  { %235 = vsyncadd [#allocation3], 4294967168 }
  0x25   :  { %236 = dma.done.wait [#allocation6], 256  }
  0x26   :  { %237 = vsyncadd [#allocation6], 4294967040  ;;  %v244_v0 = vmov 0.0|0.0   ;;  %vm245_vm0 = vmmov 0   ;;  %v246_v1 = vmov 0.0   ;;  %v42_v2 = vld [vmem:[#allocation5] sm:$0xff] }
  0x27   :  { %155 = vmatprep.subr.bf16.mxu0 %v244_v0  ;;  %152 = vmatprep.mubr.msk.f32.mxu0 %vm245_vm0, %v246_v1  ;;  %v43_v3 = vld [vmem:[#allocation5 + $0x8] sm:$0xff]  ;;  %v41_v5 = vld [vmem:[#allocation2] sm:$0xff]  ;;  %vm51_vm1 = vcmask 130048   ;;  %s247_s1 = smov [#allocation7]  }
  0x28   :  { %v156_v4 = vpack.c.bf16 %v43_v3, %v42_v2  ;;  %v143_v6 = vld [vmem:[%s316_s2] ss:$0 sm:$0xff]  ;;  %s133_s12 = sshll.u32 %s247_s1, 4  ;;  %s134_s12 = int_to_ptr.vmem [resolvable:$true] %s133_s12 }
  0x29   :  { %s212_s13 = scalar_lea.vmem %s134_s12, 128  ;;  %p217_p3 = scmp.lt.s32.totalorder %s134_s12, %s134_s12 }
  0x2a   :  { %157 = vmatpush3.bf16.msra.mxu0 %v156_v4  ;;  %p213_p2 = scmp.ne.s32.totalorder %s134_s12, %s212_s13  ;;  %p218_p4 = scmp.lt.s32.totalorder %s212_s13, %s212_s13 }
  0x2c   :  { %p219_p5 = por %p218_p4, %p217_p3 }
  0x2d   :  { %153 = vmatmul.mubr.msk.f32.vlgmr.msra.gmra.mrb[0].mxu0 %vm51_vm1, %v41_v5 }
  0x2e   :  { %p220_p6 = pnand %p219_p5, %p213_p2 }
 0x100   :  { %v121_v7 = vpop.f32.mrb[0].mxu0 }
 0x101   :  { %v122_v8 = vadd.f32 %v143_v6, %v121_v7  ;;  %v154_v9 = vpop.f32.mrb[1].mxu0 }
 0x103   :  { %166 = vtanh.f32 %v122_v8 }
 0x10d   :  { %v167_v10 = vpop.eup %166 }
 0x10e   :  { %126 = vst [vmem:[#allocation7] sm:$0xff] %v167_v10 }
 0x10f   :  { %223 = shalt.err (!%p220_p6)
}
 0x110   :  { %s224_s2 = scalar_lea.hbm %s317_s3, 128 }
 0x111   :  { %p225_p7 = scmp.ne.s32.totalorder %s317_s3, %s224_s2  ;;  %p228_p8 = scmp.lt.u32.totalorder %s224_s2, %s317_s3 }
 0x113   :  { %p230_p9 = pnand %p228_p8, %p225_p7 }
 0x115   :  { %233 = shalt.err (!%p230_p9)
}
 0x116   :  { %136 = dma.vmem_to_hbm [thread:$0]  %s134_s12, 128, %s317_s3, [#allocation4]  }
 0x117   :  { %238 = dma.done.wait [#allocation4], 128  }
 0x118   :  { %239 = vsyncadd [#allocation4], 4294967168 }
 0x119   :  { %140 = vsyncpa [#allocation3], 1 }
 0x11a   :  { %141 = vsyncpa [#allocation6], 1 }
 0x11b   :  { %142 = vsyncpa [#allocation4], 1 }

</bundles_post_ra>
